<compile_context>
chip_gen: v5e
topology: v5e:2x2
jax: 0.10.0
libtpu: 0.0.40
codegen_flags: <defaults>
</compile_context>

<pallas_src>
import jax
import jax.numpy as jnp
from jax.experimental import pallas as pl
from jax.experimental.pallas import tpu as pltpu


def _conv2x2_kernel(w_ref, b_ref, x_ref, o_ref):
    # w_ref: (C_out, 4*C_in)   -- fused per-tap weight matrix (activation dtype)
    # b_ref: (C_out, 1)        -- f32 bias column, broadcast along lanes
    # x_ref: (1, 4*C_in, TS)   -- fused tap block, spatial (H2*W2) tile on lanes
    # o_ref: (1, C_out, TS)    -- NCHW output tile, lane-dense
    acc = jnp.dot(w_ref[...], x_ref[0], preferred_element_type=jnp.float32)
    o_ref[0] = (acc + b_ref[...]).astype(o_ref.dtype)


def _pick_ts(N, S, ts_max):
    """Spatial (lane) tile size: full S when small, else a multiple of 128."""
    if S <= 128:
        return S
    ts = min(ts_max, S)
    if ts < S:
        ts = max(128, (ts // 128) * 128)
    # v7x has 2 TensorCores: with batch 1, make sure the grid has >= 2 steps.
    if N == 1 and pl.cdiv(S, ts) < 2:
        half = -(-S // 2)
        ts = max(128, ((half + 127) // 128) * 128)
    return ts


def down_sample_conv(x, weight, bias, *, ts_max=1024):
    """x: (N, C_in, H, W); weight: (C_out, C_in, 2, 2); bias: (C_out,) -> (N, C_out, H//2, W//2)."""
    N, C, H, W = x.shape
    C_out = weight.shape[0]
    H2, W2 = H // 2, W // 2
    S = H2 * W2
    K = 4 * C

    # Match PyTorch Conv2d(k=2, s=2, p=0) on odd H/W: drop the trailing row/col.
    if H != 2 * H2 or W != 2 * W2:
        x = x[:, :, : 2 * H2, : 2 * W2]

    # Single de-interleave pass: (N, C, H2, kh, W2, kw) -> (N, C, kh, kw, H2, W2)
    # -> (N, 4*C, S).  K ordering is (c, kh, kw), matching weight.reshape below.
    taps = (
        x.reshape(N, C, H2, 2, W2, 2)
        .transpose(0, 1, 3, 5, 2, 4)
        .reshape(N, K, S)
    )
    # Fused weight matrix in the activation dtype (no f32 promotion on the MXU).
    w2d = weight.reshape(C_out, K).astype(x.dtype)
    b_col = bias.reshape(C_out, 1).astype(jnp.float32)

    ts = _pick_ts(N, S, ts_max)
    grid = (N, pl.cdiv(S, ts))

    itemsize = jnp.dtype(x.dtype).itemsize
    cost = pl.CostEstimate(
        flops=2 * N * S * K * C_out,
        transcendentals=0,
        bytes_accessed=(N * K * S + N * C_out * S) * itemsize
        + w2d.size * itemsize + C_out * 4,
    )

    # VMEM budget: double-buffered tap + out blocks, plus weights/bias.
    tap_block = K * ts * itemsize
    out_block = C_out * ts * itemsize
    need = 2 * (tap_block + out_block) + 2 * (w2d.size * itemsize + C_out * 4) + (1 << 20)
    vmem_limit = int(min(max(need, 16 << 20), 56 << 20))

    out = pl.pallas_call(
        _conv2x2_kernel,
        out_shape=jax.ShapeDtypeStruct((N, C_out, S), x.dtype),
        grid=grid,
        in_specs=[
            pl.BlockSpec((C_out, K), lambda n, s: (0, 0)),      # fused weights
            pl.BlockSpec((C_out, 1), lambda n, s: (0, 0)),      # bias column
            pl.BlockSpec((1, K, ts), lambda n, s: (n, 0, s)),   # fused tap block
        ],
        out_specs=pl.BlockSpec((1, C_out, ts), lambda n, s: (n, 0, s)),
        compiler_params=pltpu.CompilerParams(
            dimension_semantics=("parallel", "parallel"),
            vmem_limit_bytes=vmem_limit,
        ),
        cost_estimate=cost,
    )(w2d, b_col, taps)

    # Free reshape back to NCHW spatial layout: (N, C_out, H2, W2).
    return out.reshape(N, C_out, H2, W2)


def _reference(x, weight, bias):
    # pure-JAX reference conv (NCHW, OIHW), stride 2, no padding
    y = jax.lax.conv_general_dilated(
        x, weight, window_strides=(2, 2), padding="VALID",
        dimension_numbers=("NCHW", "OIHW", "NCHW"))
    return y + bias.reshape(1, -1, 1, 1)


if __name__ == "__main__":
    key = jax.random.PRNGKey(0)
    kx, kw, kb = jax.random.split(key, 3)

    N, C_in, H, W = 2, 4, 16, 16
    C_out = 8

    x = jax.random.normal(kx, (N, C_in, H, W), dtype=jnp.float32)
    # deterministic synthetic parameters (PyTorch shapes: (C_out, C_in, 2, 2), (C_out,))
    fan_in = C_in * 2 * 2
    bound = 1.0 / (fan_in ** 0.5)
    weight = jax.random.uniform(kw, (C_out, C_in, 2, 2), jnp.float32, -bound, bound)
    bias = jax.random.uniform(kb, (C_out,), jnp.float32, -bound, bound)

    fwd = jax.jit(down_sample_conv)
    y = jax.block_until_ready(fwd(x, weight, bias))

    y_ref = _reference(x, weight, bias)
    assert y.shape == (N, C_out, H // 2, W // 2), y.shape
    assert jnp.allclose(y, y_ref, atol=1e-5, rtol=1e-5), float(jnp.max(jnp.abs(y - y_ref)))

    print("KERNEL_OK")
</pallas_src>

<mosaic_0001>
module attributes {stable_mosaic.version = 11 : i64} {
  func.func @_conv2x2_kernel(%arg0: i32, %arg1: i32, %arg2: memref<8x16xf32, #tpu.memory_space<vmem>>, %arg3: memref<8x1xf32, #tpu.memory_space<vmem>>, %arg4: memref<1x16x64xf32, #tpu.memory_space<vmem>>, %arg5: memref<1x8x64xf32, #tpu.memory_space<vmem>>) attributes {dimension_semantics = [#tpu.dimension_semantics<parallel>, #tpu.dimension_semantics<parallel>], iteration_bounds = array<i64: 2, 1>, scalar_prefetch = 0 : i64, scratch_operands = 0 : i64, tpu.core_type = #tpu.core_type<tc>, window_params = [{pipeline_mode = #tpu.pipeline_mode<synchronous>, transform_indices = @transform_0, window_bounds = array<i64: 8, 16>}, {pipeline_mode = #tpu.pipeline_mode<synchronous>, transform_indices = @transform_1, window_bounds = array<i64: 8, 1>}, {transform_indices = @transform_2, window_bounds = array<i64: 1, 16, 64>}, {transform_indices = @transform_3, window_bounds = array<i64: 1, 8, 64>}]} {
    %c0 = arith.constant 0 : index
    %c0_0 = arith.constant 0 : index
    %0 = vector.load %arg2[%c0, %c0_0] : memref<8x16xf32, #tpu.memory_space<vmem>>, vector<8x16xf32>
    %c0_1 = arith.constant 0 : index
    %c0_2 = arith.constant 0 : index
    %c0_3 = arith.constant 0 : index
    %1 = vector.load %arg4[%c0_1, %c0_2, %c0_3] : memref<1x16x64xf32, #tpu.memory_space<vmem>>, vector<1x16x64xf32>
    %2 = vector.shape_cast %1 : vector<1x16x64xf32> to vector<16x64xf32>
    %cst = arith.constant dense<0.000000e+00> : vector<8x64xf32>
    %3 = tpu.matmul %0, %2, %cst {dimension_numbers = #tpu.dot_dimension_numbers<[1], [0], [0], [1], [0, 0, 1, 1], [], []>} : vector<8x16xf32>, vector<16x64xf32>, vector<8x64xf32> -> vector<8x64xf32>
    %c0_4 = arith.constant 0 : index
    %c0_5 = arith.constant 0 : index
    %4 = vector.load %arg3[%c0_4, %c0_5] : memref<8x1xf32, #tpu.memory_space<vmem>>, vector<8x1xf32>
    %5 = vector.broadcast %4 : vector<8x1xf32> to vector<8x64xf32>
    %6 = arith.addf %3, %5 : vector<8x64xf32>
    %c0_6 = arith.constant 0 : index
    %c0_7 = arith.constant 0 : index
    %c0_8 = arith.constant 0 : index
    %7 = vector.load %arg5[%c0_6, %c0_7, %c0_8] : memref<1x8x64xf32, #tpu.memory_space<vmem>>, vector<1x8x64xf32>
    %8 = vector.shape_cast %7 : vector<1x8x64xf32> to vector<8x64xf32>
    %9 = vector.shape_cast %6 : vector<8x64xf32> to vector<1x8x64xf32>
    tpu.vector_store %arg5[%c0_6, %c0_7, %c0_8], %9 {strides = array<i32>} : memref<1x8x64xf32, #tpu.memory_space<vmem>>, vector<1x8x64xf32>,
    return
  }
  func.func @transform_0(%arg0: i32, %arg1: i32) -> (i32, i32) {
    %c0_i32 = arith.constant 0 : i32
    %c0_i32_0 = arith.constant 0 : i32
    %c0_i32_1 = arith.constant 0 : i32
    return %c0_i32, %c0_i32_0 : i32, i32
  }
  func.func @transform_1(%arg0: i32, %arg1: i32) -> (i32, i32) {
    %c0_i32 = arith.constant 0 : i32
    %c0_i32_0 = arith.constant 0 : i32
    %c0_i32_1 = arith.constant 0 : i32
    return %c0_i32, %c0_i32_0 : i32, i32
  }
  func.func @transform_2(%arg0: i32, %arg1: i32) -> (i32, i32, i32) {
    %c0_i32 = arith.constant 0 : i32
    %c0_i32_0 = arith.constant 0 : i32
    return %arg0, %c0_i32, %arg1 : i32, i32, i32
  }
  func.func @transform_3(%arg0: i32, %arg1: i32) -> (i32, i32, i32) {
    %c0_i32 = arith.constant 0 : i32
    %c0_i32_0 = arith.constant 0 : i32
    return %arg0, %c0_i32, %arg1 : i32, i32, i32
  }
}

</mosaic_0001>

<bundles_post_ra>
// kernel: down_sample_conv.1
= control target key start
LH: loop header
LB: loop body
LE: loop exit
PB: predicated region body
PF: predicated region fallthrough
CT: control target
= control target key end

     0   :  { %s395_s12 = smov 0   ;;  %s397_s13 = smov 0   ;;  %s431_s0 = inlined_call_operand.vmem [shape: f32[8,16], index: 0, kind: input, shape index: {}]   ;;  %s432_s1 = inlined_call_operand.vmem [shape: f32[8,1], index: 1, kind: input, shape index: {}]   ;;  %s433_s2 = inlined_call_operand.vmem [shape: f32[2,16,64], index: 2, kind: input, shape index: {}]   ;;  %s434_s3 = inlined_call_operand.vmem [shape: f32[2,8,64], index: 3, kind: output, shape index: {}]  }
   0x1   :  { %s399_s14 = smov 0  }
   0x2 LB: > { %s25_s15 = sadd.s32 1, %s368_s13  ;;  %p316_p0 = scmp.ge.s32.totalorder %s372_s14, 1  ;;  %s372_s14 = sphi %s399_s14, %s13_s14   ;;  %s368_s13 = sphi %s397_s13, %s436_s13   ;;  %s364_s12 = sphi %s395_s12, %s435_s12  }
   0x3   : > { %p27_p1 = scmp.ge.s32.totalorder %s25_s15, 2  ;;  %p156_p2 = scmp.lt.s32.totalorder %s372_s14, 3 }
   0x5   : > { %s438_s15 = smov (%p27_p1, %s25_s15), 0  ;;  %p157_p3 = pnand %p316_p0, %p156_p2 }
   0x6   : > { %p185_p4 = scmp.lt.s32.totalorder (!%p157_p3), %s364_s12, 1 }
   0x7   : > { %160 = sbr.rel (%p157_p3) target bundleno = 148 (0x94), region = 32 }
   0xc   : > { %v203_v0 = vld [vmem:[%s432_s1] sm:$0xff]  ;;  %v374_v1 = vmov 0   ;;  %s440_s12 = smov (!%p185_p4, %s364_s12), 1  ;;  %vm209_vm0 = vcmask 130048   ;;  %vm233_vm1 = vcmask 523264  }
   0xd   : > { %349 = vset.pattern.permute.xlu0 %v374_v1  ;;  %s323_s18 = sshll.u32 %s440_s12, 4  ;;  %v200_v4 = vld [vmem:[%s431_s0] sm:$0xff]  ;;  %s319_s24 = sshll.u32 %s440_s12, 3 }
   0xe   : > { %206 = vperm.xlu0 %349, %v203_v0   ;;  %s192_s21 = scalar_lea.vmem %s433_s2, %s323_s18  ;;  %s199_s27 = scalar_lea.vmem %s434_s3, %s319_s24 }
   0xf   : > { %v202_v2 = vld [vmem:[%s192_s21 + $0x8] sm:$0xff]  ;;  %v201_v3 = vld [vmem:[%s192_s21] sm:$0xff] }
  0x10   : > { %227 = vmatpush.msra.mxu0 %v202_v2 }
  0x12   : > { %228 = vmatpush.msra.mxu0 %v201_v3 }
  0x13   : > { %320 = vmatmul.msk.f32.vlgmr.msra.gmra.mxu0 %vm209_vm0, %v200_v4 }
  0x80   : > { %v207_v5 = vpop.permute.xlu0 %206 }
  0x90   : > { %v230_v6 = vpop.f32.mrf.mxu0 }
  0x91   : > { %v231_v7 = vadd.f32 %v230_v6, %v207_v5 }
  0x93   : > { %234 = vst.msk [vmem:[%s199_s27] sm:$0xff] %vm233_vm1, %v231_v7 }
  0x94 PF: > { %s13_s14 = sadd.s32 1, %s372_s14   ;;  %s435_s12 = smov %s368_s13 }
  0x95   : > { %p10_p5 = scmp.ge.s32.totalorder %s13_s14, 4   ;;  %s436_s13 = smov %s438_s15 }
  0x97   :  { %12 = sbr.rel (!%p10_p5) target bundleno = 2 (0x2), region = 62 }

</bundles_post_ra>
